<compile_context>
chip_gen: v7x
topology: tpu7x:2x2x1
jax: 0.10.0
libtpu: 0.0.40
codegen_flags: <defaults>
</compile_context>

<pallas_src>
import functools

import jax
import jax.numpy as jnp
from jax.experimental import pallas as pl
from jax.experimental.pallas import tpu as pltpu

_LANE = 128
_SUBLANE = 8


def _round_up(n: int, m: int) -> int:
    return ((n + m - 1) // m) * m


def _cdiv(a: int, b: int) -> int:
    return -(-a // b)


def _pick_tile(dim: int, cap: int) -> int:
    """Largest multiple of 128 <= cap that divides dim (dim is a multiple of 128)."""
    t = max(_LANE, (min(dim, cap) // _LANE) * _LANE)
    while t > _LANE and dim % t != 0:
        t -= _LANE
    return t


def _chip_props():
    """(vmem_capacity_bytes, tensorcores_per_chip) with conservative defaults."""
    vmem_cap, n_cores = 64 << 20, 1
    try:
        kind = jax.devices()[0].device_kind.lower()
    except Exception:
        return vmem_cap, n_cores
    if "v7" in kind or "7x" in kind:
        vmem_cap, n_cores = 64 << 20, 2
    elif "v6" in kind or "v5" in kind or "v4" in kind:
        vmem_cap = 128 << 20
    return vmem_cap, n_cores


# --------------------------- fused (all layers) kernel ----------------------
def _fused_mlp_kernel(*refs, n_layers, inter_pdims, act_dtype, use_scratch):
    # refs = (x_ref, w1, b1, ..., wN, bN, o_ref [, h_scratch])
    if use_scratch:
        h_scr = refs[-1]
        o_ref = refs[-2]
    else:
        h_scr = None
        o_ref = refs[-1]
    x_ref = refs[0]

    h = x_ref[...]                                    # (tm, D0_pad), act_dtype
    for i in range(n_layers):
        w_ref = refs[1 + 2 * i]                       # (Din_pad, Dout_pad), act_dtype
        b_ref = refs[2 + 2 * i]                       # (1, Dout_pad), f32
        y = jnp.dot(h, w_ref[...], preferred_element_type=jnp.float32)
        y = y + b_ref[...]                            # f32 epilogue
        if i < n_layers - 1:
            y = jnp.maximum(y, 0.0).astype(act_dtype)  # ReLU gate + one cast
            if use_scratch:
                d = inter_pdims[i]
                h_scr[:, :d] = y                      # lane-aligned VMEM staging
                h = h_scr[:, :d]
            else:
                h = y
        else:
            o_ref[...] = y.astype(o_ref.dtype)


def _fused_call(x_p, padded_params, pdims, inter_pdims, tm, n_tiles, act_dtype,
                out_dtype, budget, param_bytes, single_buffer_params=True):
    n_layers = len(padded_params)
    b_pad = x_p.shape[0]
    use_scratch = bool(inter_pdims) and tm >= 512
    act_sz = jnp.dtype(act_dtype).itemsize
    out_sz = jnp.dtype(out_dtype).itemsize

    def _const_spec(shape):
        if single_buffer_params:
            return pl.BlockSpec(shape, lambda i: (0, 0),
                                pipeline_mode=pl.Buffered(1))
        return pl.BlockSpec(shape, lambda i: (0, 0))

    in_specs = [pl.BlockSpec((tm, pdims[0]), lambda i: (i, 0))]
    flat_inputs = [x_p]
    for wt, bp in padded_params:
        in_specs.append(_const_spec(wt.shape))
        in_specs.append(_const_spec(bp.shape))
        flat_inputs.append(wt)
        flat_inputs.append(bp)
    out_specs = pl.BlockSpec((tm, pdims[-1]), lambda i: (i, 0))

    scratch_shapes = []
    if use_scratch:
        scratch_shapes.append(pltpu.VMEM((tm, max(inter_pdims)), act_dtype))

    flops = sum(2 * b_pad * pdims[i] * pdims[i + 1] for i in range(n_layers))
    bytes_accessed = int(x_p.size * x_p.dtype.itemsize + param_bytes
                         + b_pad * pdims[-1] * out_sz)
    cost = pl.CostEstimate(flops=int(flops), transcendentals=0,
                           bytes_accessed=bytes_accessed)

    param_factor = 1 if single_buffer_params else 2
    needed = (param_factor * param_bytes
              + 2 * tm * (pdims[0] * act_sz + pdims[-1] * out_sz)   # 2x-buffered I/O
              + 2 * tm * max(pdims) * 4                             # live activations
              + (tm * max(inter_pdims) * act_sz if use_scratch else 0))
    vmem_limit = int(min(budget, max(8 << 20, 2 * needed)))

    kernel = functools.partial(
        _fused_mlp_kernel, n_layers=n_layers, inter_pdims=inter_pdims,
        act_dtype=act_dtype, use_scratch=use_scratch)

    return pl.pallas_call(
        kernel,
        out_shape=jax.ShapeDtypeStruct((b_pad, pdims[-1]), out_dtype),
        grid=(n_tiles,),
        in_specs=in_specs,
        out_specs=out_specs,
        scratch_shapes=scratch_shapes,
        compiler_params=pltpu.CompilerParams(
            dimension_semantics=("parallel",),
            vmem_limit_bytes=vmem_limit),
        cost_estimate=cost,
    )(*flat_inputs)


# ---------------------- per-layer tiled fallback (big dims) -----------------
def _linear_kernel(x_ref, w_ref, b_ref, o_ref, acc_ref, *, relu):
    @pl.when(pl.program_id(2) == 0)
    def _():
        acc_ref[...] = jnp.zeros_like(acc_ref)

    acc_ref[...] += jnp.dot(x_ref[...], w_ref[...],
                            preferred_element_type=jnp.float32)

    @pl.when(pl.program_id(2) == pl.num_programs(2) - 1)
    def _():
        y = acc_ref[...] + b_ref[...]
        if relu:
            y = jnp.maximum(y, 0.0)
        o_ref[...] = y.astype(o_ref.dtype)


def _tiled_linear(x_p, w_t, b_p, *, relu, out_dtype, tm, budget):
    M, K = x_p.shape
    _, N = w_t.shape
    tn = _pick_tile(N, 512)
    tk = _pick_tile(K, 512)
    itm = x_p.dtype.itemsize
    out_sz = jnp.dtype(out_dtype).itemsize
    needed = (2 * (tm * tk + tk * tn) * itm + 2 * tm * tn * out_sz
              + tm * tn * 4 + 2 * tn * 4)
    vmem_limit = int(min(budget, max(8 << 20, 2 * needed)))
    cost = pl.CostEstimate(
        flops=int(2 * M * N * K), transcendentals=0,
        bytes_accessed=int(x_p.size * itm + w_t.size * w_t.dtype.itemsize
                           + b_p.size * 4 + M * N * out_sz))
    return pl.pallas_call(
        functools.partial(_linear_kernel, relu=relu),
        out_shape=jax.ShapeDtypeStruct((M, N), out_dtype),
        grid=(M // tm, N // tn, K // tk),
        in_specs=[pl.BlockSpec((tm, tk), lambda i, j, k: (i, k)),
                  pl.BlockSpec((tk, tn), lambda i, j, k: (k, j)),
                  pl.BlockSpec((1, tn), lambda i, j, k: (0, j))],
        out_specs=pl.BlockSpec((tm, tn), lambda i, j, k: (i, j)),
        scratch_shapes=[pltpu.VMEM((tm, tn), jnp.float32)],
        compiler_params=pltpu.CompilerParams(
            dimension_semantics=("parallel", "parallel", "arbitrary"),
            vmem_limit_bytes=vmem_limit),
        cost_estimate=cost,
    )(x_p, w_t, b_p)


def _tiled_fallback(x_p, padded_params, tm, act_dtype, out_dtype, budget):
    n_layers = len(padded_params)
    h = x_p
    for i, (wt, bp) in enumerate(padded_params):
        last = (i == n_layers - 1)
        h = _tiled_linear(h, wt, bp, relu=not last,
                          out_dtype=(out_dtype if last else act_dtype),
                          tm=tm, budget=budget)
    return h


# --------------------------------- wrapper ----------------------------------
def mlp_forward(x, params, *, compute_dtype=jnp.bfloat16, block_m=None,
                force_path=None):
    """MLP forward matching the PyTorch module.

    x:      (batch, input_dim)
    params: list of (W, b); W has PyTorch Linear layout (out, in), b is (out,).
    compute_dtype: matmul operand dtype (bf16 default; jnp.float32 = exact).
    """
    out_dtype = x.dtype
    batch, d_in = x.shape
    n_layers = len(params)
    act_dtype = jnp.dtype(jnp.float32 if compute_dtype is None else compute_dtype)
    act_sz = act_dtype.itemsize
    out_sz = jnp.dtype(out_dtype).itemsize

    dims = [d_in] + [int(w.shape[0]) for (w, _) in params]
    pdims = [_round_up(d, _LANE) for d in dims]
    inter_pdims = tuple(pdims[1:-1])

    # --- one-time layout plumbing: pad + pre-transpose parameters ----------
    padded_params = []
    for i, (w, b) in enumerate(params):
        d_out_i, d_in_i = int(w.shape[0]), int(w.shape[1])
        wt = jnp.zeros((pdims[i], pdims[i + 1]), dtype=act_dtype)
        wt = wt.at[:d_in_i, :d_out_i].set(w.T.astype(act_dtype))
        bp = jnp.zeros((1, pdims[i + 1]), dtype=jnp.float32)
        bp = bp.at[0, :d_out_i].set(b.astype(jnp.float32))
        padded_params.append((wt, bp))

    param_bytes = sum(wt.size * wt.dtype.itemsize + bp.size * bp.dtype.itemsize
                      for wt, bp in padded_params)

    # --- generation-aware budget & core count -------------------------------
    vmem_cap, n_cores = _chip_props()
    budget = (44 << 20) if vmem_cap <= (64 << 20) else (100 << 20)

    # --- batch tiling: sublane-only padding, parallel grid axis -------------
    if block_m is None:
        block_m = 1024 if max(pdims) <= 512 else 512
    block_m = max(_SUBLANE, _round_up(int(block_m), _SUBLANE))

    n_tiles = _cdiv(batch, block_m)
    if n_cores >= 2 and batch > 2 * _SUBLANE:
        n_tiles = max(n_tiles, 2)           # keep both v7x TensorCores busy
    tm = _round_up(_cdiv(batch, n_tiles), _SUBLANE)

    def _fused_bytes(tm_):
        io = 2 * tm_ * (pdims[0] * act_sz + pdims[-1] * out_sz)
        act = 2 * tm_ * max(pdims) * 4
        scr = tm_ * max(inter_pdims) * act_sz if (tm_ >= 512 and inter_pdims) else 0
        return param_bytes + io + act + scr

    while tm > _SUBLANE and _fused_bytes(tm) > int(0.8 * budget):
        tm = _round_up(max(_SUBLANE, tm // 2), _SUBLANE)

    use_fused = (param_bytes <= int(0.6 * budget)
                 and _fused_bytes(tm) <= int(0.8 * budget))
    if force_path == "fused":
        use_fused = True
    elif force_path == "tiled":
        use_fused = False

    n_tiles = _cdiv(batch, tm)
    b_pad = n_tiles * tm

    # pad/cast x once (activations travel in compute dtype)
    if (b_pad, pdims[0]) != (batch, d_in) or x.dtype != act_dtype:
        x_p = jnp.zeros((b_pad, pdims[0]), dtype=act_dtype)
        x_p = x_p.at[:batch, :d_in].set(x.astype(act_dtype))
    else:
        x_p = x

    if use_fused:
        try:
            out_padded = _fused_call(x_p, padded_params, pdims, inter_pdims, tm,
                                     n_tiles, act_dtype, out_dtype, budget,
                                     param_bytes, single_buffer_params=True)
        except Exception:
            # Robustness: retry with default (double-buffered) param blocks.
            out_padded = _fused_call(x_p, padded_params, pdims, inter_pdims, tm,
                                     n_tiles, act_dtype, out_dtype, budget,
                                     param_bytes, single_buffer_params=False)
    else:
        out_padded = _tiled_fallback(x_p, padded_params, tm, act_dtype,
                                     out_dtype, budget)

    if b_pad == batch and pdims[-1] == dims[-1]:
        return out_padded
    return out_padded[:batch, :dims[-1]]


# ----------------------------- parameters / reference -----------------------
def _orthogonal(key, out_dim, in_dim, dtype=jnp.float32, w_scale=1.0):
    """Deterministic orthogonal init (mirrors torch.nn.init.orthogonal_)."""
    rows, cols = out_dim, in_dim
    flat = jax.random.normal(key, (rows, cols), dtype=jnp.float32)
    if rows < cols:
        flat = flat.T
    q, r = jnp.linalg.qr(flat)
    d = jnp.sign(jnp.diag(r))
    d = jnp.where(d == 0, 1.0, d)
    q = q * d[None, :]
    if rows < cols:
        q = q.T
    return (w_scale * q).astype(dtype)


def make_mlp_params(key, input_dim, output_dims=(64, 64), dtype=jnp.float32):
    dims = (input_dim,) + tuple(output_dims)
    params = []
    for d_in, d_out in zip(dims[:-1], dims[1:]):
        key, sub = jax.random.split(key)
        w = _orthogonal(sub, d_out, d_in, dtype=dtype, w_scale=1.0)
        b = jnp.zeros((d_out,), dtype=dtype)  # constant_(bias, 0)
        params.append((w, b))
    return params


def mlp_reference(x, params):
    n = len(params)
    h = x.astype(jnp.float32)
    for idx, (w, b) in enumerate(params):
        h = jnp.dot(h, w.T.astype(jnp.float32),
                    precision=jax.lax.Precision.HIGHEST) + b.astype(jnp.float32)
        if idx < n - 1:
            h = jnp.maximum(h, 0.0)
    return h


if __name__ == "__main__":
    key = jax.random.PRNGKey(0)
    k_x, k_p = jax.random.split(key)

    batch = 8
    input_dim = 32
    output_dims = (64, 64)

    x = jax.random.normal(k_x, (batch, input_dim), dtype=jnp.float32)
    params = make_mlp_params(k_p, input_dim, output_dims, dtype=jnp.float32)

    ref = mlp_reference(x, params)

    # Default path: bf16 MXU operands, f32 accumulation + epilogue.
    out = jax.block_until_ready(mlp_forward(x, params))
    assert out.shape == (batch, output_dims[-1])
    assert jnp.allclose(out, ref, atol=5e-2, rtol=5e-2), \
        float(jnp.max(jnp.abs(out - ref)))

    # Opt-in exact f32 path.
    out_f32 = jax.block_until_ready(
        mlp_forward(x, params, compute_dtype=jnp.float32))
    assert jnp.allclose(out_f32, ref, atol=2e-3, rtol=2e-3), \
        float(jnp.max(jnp.abs(out_f32 - ref)))

    # Per-layer tiled fallback path (used automatically when weights are too
    # large to keep resident in VMEM); exercised here for coverage.
    out_tiled = jax.block_until_ready(mlp_forward(x, params, force_path="tiled"))
    assert jnp.allclose(out_tiled, ref, atol=5e-2, rtol=5e-2), \
        float(jnp.max(jnp.abs(out_tiled - ref)))

    print("KERNEL_OK")
</pallas_src>

<mosaic_0001>
module attributes {stable_mosaic.version = 11 : i64} {
  func.func @_fused_mlp_kernel(%arg0: i32, %arg1: memref<8x128xbf16, #tpu.memory_space<vmem>>, %arg2: memref<128x128xbf16, #tpu.memory_space<vmem>>, %arg3: memref<1x128xf32, #tpu.memory_space<vmem>>, %arg4: memref<128x128xbf16, #tpu.memory_space<vmem>>, %arg5: memref<1x128xf32, #tpu.memory_space<vmem>>, %arg6: memref<8x128xf32, #tpu.memory_space<vmem>>) attributes {dimension_semantics = [#tpu.dimension_semantics<parallel>], iteration_bounds = array<i64: 1>, scalar_prefetch = 0 : i64, scratch_operands = 0 : i64, tpu.core_type = #tpu.core_type<tc>, window_params = [{transform_indices = @transform_0, window_bounds = array<i64: 8, 128>}, {pipeline_mode = #tpu.pipeline_mode<synchronous>, transform_indices = @transform_1, window_bounds = array<i64: 128, 128>}, {pipeline_mode = #tpu.pipeline_mode<synchronous>, transform_indices = @transform_2, window_bounds = array<i64: 1, 128>}, {pipeline_mode = #tpu.pipeline_mode<synchronous>, transform_indices = @transform_3, window_bounds = array<i64: 128, 128>}, {pipeline_mode = #tpu.pipeline_mode<synchronous>, transform_indices = @transform_4, window_bounds = array<i64: 1, 128>}, {transform_indices = @transform_5, window_bounds = array<i64: 8, 128>}]} {
    %c0 = arith.constant 0 : index
    %c0_0 = arith.constant 0 : index
    %0 = vector.load %arg1[%c0, %c0_0] : memref<8x128xbf16, #tpu.memory_space<vmem>>, vector<8x128xbf16>
    %c0_1 = arith.constant 0 : index
    %c0_2 = arith.constant 0 : index
    %1 = vector.load %arg2[%c0_1, %c0_2] : memref<128x128xbf16, #tpu.memory_space<vmem>>, vector<128x128xbf16>
    %cst = arith.constant dense<0.000000e+00> : vector<8x128xf32>
    %2 = tpu.matmul %0, %1, %cst {dimension_numbers = #tpu.dot_dimension_numbers<[1], [0], [0], [1], [0, 0, 1, 1], [], []>} : vector<8x128xbf16>, vector<128x128xbf16>, vector<8x128xf32> -> vector<8x128xf32>
    %c0_3 = arith.constant 0 : index
    %c0_4 = arith.constant 0 : index
    %3 = vector.load %arg3[%c0_3, %c0_4] : memref<1x128xf32, #tpu.memory_space<vmem>>, vector<1x128xf32>
    %4 = vector.broadcast %3 : vector<1x128xf32> to vector<8x128xf32>
    %5 = arith.addf %2, %4 : vector<8x128xf32>
    %cst_5 = arith.constant 0.000000e+00 : f32
    %6 = vector.broadcast %cst_5 : f32 to vector<8x128xf32>
    %7 = arith.maximumf %5, %6 : vector<8x128xf32>
    %8 = arith.truncf %7 : vector<8x128xf32> to vector<8x128xbf16>
    %c0_6 = arith.constant 0 : index
    %c0_7 = arith.constant 0 : index
    %9 = vector.load %arg4[%c0_6, %c0_7] : memref<128x128xbf16, #tpu.memory_space<vmem>>, vector<128x128xbf16>
    %cst_8 = arith.constant dense<0.000000e+00> : vector<8x128xf32>
    %10 = tpu.matmul %8, %9, %cst_8 {dimension_numbers = #tpu.dot_dimension_numbers<[1], [0], [0], [1], [0, 0, 1, 1], [], []>} : vector<8x128xbf16>, vector<128x128xbf16>, vector<8x128xf32> -> vector<8x128xf32>
    %c0_9 = arith.constant 0 : index
    %c0_10 = arith.constant 0 : index
    %11 = vector.load %arg5[%c0_9, %c0_10] : memref<1x128xf32, #tpu.memory_space<vmem>>, vector<1x128xf32>
    %12 = vector.broadcast %11 : vector<1x128xf32> to vector<8x128xf32>
    %13 = arith.addf %10, %12 : vector<8x128xf32>
    %c0_11 = arith.constant 0 : index
    %c0_12 = arith.constant 0 : index
    %14 = vector.load %arg6[%c0_11, %c0_12] : memref<8x128xf32, #tpu.memory_space<vmem>>, vector<8x128xf32>
    tpu.vector_store %arg6[%c0_11, %c0_12], %13 {strides = array<i32>} : memref<8x128xf32, #tpu.memory_space<vmem>>, vector<8x128xf32>,
    return
  }
  func.func @transform_0(%arg0: i32) -> (i32, i32) {
    %c0_i32 = arith.constant 0 : i32
    %c0_i32_0 = arith.constant 0 : i32
    return %arg0, %c0_i32 : i32, i32
  }
  func.func @transform_1(%arg0: i32) -> (i32, i32) {
    %c0_i32 = arith.constant 0 : i32
    %c0_i32_0 = arith.constant 0 : i32
    %c0_i32_1 = arith.constant 0 : i32
    return %c0_i32, %c0_i32_0 : i32, i32
  }
  func.func @transform_2(%arg0: i32) -> (i32, i32) {
    %c0_i32 = arith.constant 0 : i32
    %c0_i32_0 = arith.constant 0 : i32
    %c0_i32_1 = arith.constant 0 : i32
    return %c0_i32, %c0_i32_0 : i32, i32
  }
  func.func @transform_3(%arg0: i32) -> (i32, i32) {
    %c0_i32 = arith.constant 0 : i32
    %c0_i32_0 = arith.constant 0 : i32
    %c0_i32_1 = arith.constant 0 : i32
    return %c0_i32, %c0_i32_0 : i32, i32
  }
  func.func @transform_4(%arg0: i32) -> (i32, i32) {
    %c0_i32 = arith.constant 0 : i32
    %c0_i32_0 = arith.constant 0 : i32
    %c0_i32_1 = arith.constant 0 : i32
    return %c0_i32, %c0_i32_0 : i32, i32
  }
  func.func @transform_5(%arg0: i32) -> (i32, i32) {
    %c0_i32 = arith.constant 0 : i32
    %c0_i32_0 = arith.constant 0 : i32
    return %arg0, %c0_i32 : i32, i32
  }
}

module attributes {stable_mosaic.version = 11 : i64} {
  func.func @_fused_mlp_kernel(%arg0: i32, %arg1: memref<8x128xbf16, #tpu.memory_space<vmem>>, %arg2: memref<128x128xbf16, #tpu.memory_space<vmem>>, %arg3: memref<1x128xf32, #tpu.memory_space<vmem>>, %arg4: memref<128x128xbf16, #tpu.memory_space<vmem>>, %arg5: memref<1x128xf32, #tpu.memory_space<vmem>>, %arg6: memref<8x128xf32, #tpu.memory_space<vmem>>) attributes {dimension_semantics = [#tpu.dimension_semantics<parallel>], iteration_bounds = array<i64: 1>, scalar_prefetch = 0 : i64, scratch_operands = 0 : i64, tpu.core_type = #tpu.core_type<tc>, window_params = [{transform_indices = @transform_0, window_bounds = array<i64: 8, 128>}, {pipeline_mode = #tpu.pipeline_mode<synchronous>, transform_indices = @transform_1, window_bounds = array<i64: 128, 128>}, {pipeline_mode = #tpu.pipeline_mode<synchronous>, transform_indices = @transform_2, window_bounds = array<i64: 1, 128>}, {pipeline_mode = #tpu.pipeline_mode<synchronous>, transform_indices = @transform_3, window_bounds = array<i64: 128, 128>}, {pipeline_mode = #tpu.pipeline_mode<synchronous>, transform_indices = @transform_4, window_bounds = array<i64: 1, 128>}, {transform_indices = @transform_5, window_bounds = array<i64: 8, 128>}]} {
    %c0 = arith.constant 0 : index
    %c0_0 = arith.constant 0 : index
    %0 = vector.load %arg1[%c0, %c0_0] : memref<8x128xbf16, #tpu.memory_space<vmem>>, vector<8x128xbf16>
    %c0_1 = arith.constant 0 : index
    %c0_2 = arith.constant 0 : index
    %1 = vector.load %arg2[%c0_1, %c0_2] : memref<128x128xbf16, #tpu.memory_space<vmem>>, vector<128x128xbf16>
    %cst = arith.constant dense<0.000000e+00> : vector<8x128xf32>
    %2 = tpu.matmul %0, %1, %cst {dimension_numbers = #tpu.dot_dimension_numbers<[1], [0], [0], [1], [0, 0, 1, 1], [], []>} : vector<8x128xbf16>, vector<128x128xbf16>, vector<8x128xf32> -> vector<8x128xf32>
    %c0_3 = arith.constant 0 : index
    %c0_4 = arith.constant 0 : index
    %3 = vector.load %arg3[%c0_3, %c0_4] : memref<1x128xf32, #tpu.memory_space<vmem>>, vector<1x128xf32>
    %4 = vector.broadcast %3 : vector<1x128xf32> to vector<8x128xf32>
    %5 = arith.addf %2, %4 : vector<8x128xf32>
    %cst_5 = arith.constant 0.000000e+00 : f32
    %6 = vector.broadcast %cst_5 : f32 to vector<8x128xf32>
    %7 = arith.maximumf %5, %6 : vector<8x128xf32>
    %8 = arith.truncf %7 : vector<8x128xf32> to vector<8x128xbf16>
    %c0_6 = arith.constant 0 : index
    %c0_7 = arith.constant 0 : index
    %9 = vector.load %arg4[%c0_6, %c0_7] : memref<128x128xbf16, #tpu.memory_space<vmem>>, vector<128x128xbf16>
    %cst_8 = arith.constant dense<0.000000e+00> : vector<8x128xf32>
    %10 = tpu.matmul %8, %9, %cst_8 {dimension_numbers = #tpu.dot_dimension_numbers<[1], [0], [0], [1], [0, 0, 1, 1], [], []>} : vector<8x128xbf16>, vector<128x128xbf16>, vector<8x128xf32> -> vector<8x128xf32>
    %c0_9 = arith.constant 0 : index
    %c0_10 = arith.constant 0 : index
    %11 = vector.load %arg5[%c0_9, %c0_10] : memref<1x128xf32, #tpu.memory_space<vmem>>, vector<1x128xf32>
    %12 = vector.broadcast %11 : vector<1x128xf32> to vector<8x128xf32>
    %13 = arith.addf %10, %12 : vector<8x128xf32>
    %c0_11 = arith.constant 0 : index
    %c0_12 = arith.constant 0 : index
    %14 = vector.load %arg6[%c0_11, %c0_12] : memref<8x128xf32, #tpu.memory_space<vmem>>, vector<8x128xf32>
    tpu.vector_store %arg6[%c0_11, %c0_12], %13 {strides = array<i32>} : memref<8x128xf32, #tpu.memory_space<vmem>>, vector<8x128xf32>,
    return
  }
  func.func @transform_0(%arg0: i32) -> (i32, i32) {
    %c0_i32 = arith.constant 0 : i32
    %c0_i32_0 = arith.constant 0 : i32
    return %arg0, %c0_i32 : i32, i32
  }
  func.func @transform_1(%arg0: i32) -> (i32, i32) {
    %c0_i32 = arith.constant 0 : i32
    %c0_i32_0 = arith.constant 0 : i32
    %c0_i32_1 = arith.constant 0 : i32
    return %c0_i32, %c0_i32_0 : i32, i32
  }
  func.func @transform_2(%arg0: i32) -> (i32, i32) {
    %c0_i32 = arith.constant 0 : i32
    %c0_i32_0 = arith.constant 0 : i32
    %c0_i32_1 = arith.constant 0 : i32
    return %c0_i32, %c0_i32_0 : i32, i32
  }
  func.func @transform_3(%arg0: i32) -> (i32, i32) {
    %c0_i32 = arith.constant 0 : i32
    %c0_i32_0 = arith.constant 0 : i32
    %c0_i32_1 = arith.constant 0 : i32
    return %c0_i32, %c0_i32_0 : i32, i32
  }
  func.func @transform_4(%arg0: i32) -> (i32, i32) {
    %c0_i32 = arith.constant 0 : i32
    %c0_i32_0 = arith.constant 0 : i32
    %c0_i32_1 = arith.constant 0 : i32
    return %c0_i32, %c0_i32_0 : i32, i32
  }
  func.func @transform_5(%arg0: i32) -> (i32, i32) {
    %c0_i32 = arith.constant 0 : i32
    %c0_i32_0 = arith.constant 0 : i32
    return %arg0, %c0_i32 : i32, i32
  }
}

</mosaic_0001>

<bundles_post_ra>
// kernel: tpu_custom_call.1
= control target key start
LH: loop header
LB: loop body
LE: loop exit
PB: predicated region body
PF: predicated region fallthrough
CT: control target
= control target key end

     0   :  { %10 = vsyncpa [#allocation3], 0  ;;  %s595_s0 = inlined_call_operand.hbm [shape: bf16[8,128], index: 0, kind: input, shape index: {}]   ;;  %s596_s1 = inlined_call_operand.hbm [shape: bf16[128,128], index: 1, kind: input, shape index: {}]   ;;  %s597_s2 = inlined_call_operand.vmem [shape: f32[1,128], index: 2, kind: input, shape index: {}]   ;;  %s598_s3 = inlined_call_operand.hbm [shape: bf16[128,128], index: 3, kind: input, shape index: {}]   ;;  %s599_s4 = inlined_call_operand.vmem [shape: f32[1,128], index: 4, kind: input, shape index: {}]   ;;  %s600_s5 = inlined_call_operand.hbm [shape: f32[8,128], index: 5, kind: output, shape index: {}]  }
   0x1   :  { %11 = vsyncpa [#allocation6], 0 }
   0x2   :  { %12 = vsyncpa [#allocation4], 0  ;;  %s497_s18 = smov [#allocation5]   ;;  %s403_s22 = scalar_lea.hbm %s596_s1, 1024 }
   0x3   :  { %s28_s19 = sshll.u32 %s497_s18, 4  ;;  %p404_p0 = scmp.ne.s32.totalorder %s596_s1, %s403_s22  ;;  %s29_s19 = int_to_ptr.vmem [resolvable:$true] %s28_s19 }
   0x4   :  { %p407_p1 = scmp.lt.u32.totalorder %s403_s22, %s596_s1 }
   0x6   :  { %p409_p2 = pnand %p407_p1, %p404_p0 }
   0x8   :  { %412 = shalt.err (!%p409_p2)
}
   0x9   :  { %s413_s27 = scalar_lea.vmem %s29_s19, 1024  ;;  %p418_p4 = scmp.lt.s32.totalorder %s29_s19, %s29_s19 }
   0xa   :  { %p414_p3 = scmp.ne.s32.totalorder %s29_s19, %s413_s27  ;;  %p419_p5 = scmp.lt.s32.totalorder %s413_s27, %s413_s27 }
   0xc   :  { %p420_p6 = por %p419_p5, %p418_p4 }
   0xe   :  { %p421_p7 = pnand %p420_p6, %p414_p3 }
  0x10   :  { %424 = shalt.err (!%p421_p7)
}
  0x11   :  { %s498_s28 = smov 64   ;;  %s499_s29 = smov 4  }
  0x12   :  { %34 = dma.hbm_to_vmem [thread:$0]  %s596_s1, 1024, %s29_s19, [#allocation6], %s498_s28, %s498_s28, %s499_s29  }
  0x13   :  { %s500_s7 = smov [#allocation2]   ;;  %s501_s9 = smov [#allocation7]  }
  0x14   :  { %s19_s8 = sshll.u32 %s500_s7, 4  ;;  %s42_s10 = sshll.u32 %s501_s9, 4  ;;  %s20_s8 = int_to_ptr.vmem [resolvable:$true] %s19_s8  ;;  %s43_s10 = int_to_ptr.vmem [resolvable:$true] %s42_s10 }
  0x15   :  { %s425_s13 = scalar_lea.hbm %s595_s0, 64 }
  0x16   :  { %p426_p8 = scmp.ne.s32.totalorder %s595_s0, %s425_s13  ;;  %p429_p9 = scmp.lt.u32.totalorder %s425_s13, %s595_s0 }
  0x18   :  { %p431_p10 = pnand %p429_p9, %p426_p8 }
  0x1a   :  { %434 = shalt.err (!%p431_p10)
}
  0x1b   :  { %s435_s1 = scalar_lea.vmem %s20_s8, 64  ;;  %p440_p12 = scmp.lt.s32.totalorder %s20_s8, %s20_s8 }
  0x1c   :  { %p436_p11 = scmp.ne.s32.totalorder %s20_s8, %s435_s1  ;;  %p441_p13 = scmp.lt.s32.totalorder %s435_s1, %s435_s1 }
  0x1e   :  { %p442_p0 = por %p441_p13, %p440_p12 }
  0x20   :  { %p443_p1 = pnand %p442_p0, %p436_p11 }
  0x22   :  { %446 = shalt.err (!%p443_p1)
}
  0x23   :  { %22 = dma.hbm_to_vmem [thread:$0]  %s595_s0, 64, %s20_s8, [#allocation3]  }
  0x24   :  { %s447_s22 = scalar_lea.hbm %s598_s3, 1024 }
  0x25   :  { %p448_p2 = scmp.ne.s32.totalorder %s598_s3, %s447_s22  ;;  %p451_p3 = scmp.lt.u32.totalorder %s447_s22, %s598_s3 }
  0x27   :  { %p453_p4 = pnand %p451_p3, %p448_p2 }
  0x29   :  { %456 = shalt.err (!%p453_p4)
}
  0x2a   :  { %s457_s27 = scalar_lea.vmem %s43_s10, 1024  ;;  %p462_p6 = scmp.lt.s32.totalorder %s43_s10, %s43_s10 }
  0x2b   :  { %p458_p5 = scmp.ne.s32.totalorder %s43_s10, %s457_s27  ;;  %p463_p7 = scmp.lt.s32.totalorder %s457_s27, %s457_s27 }
  0x2d   :  { %p464_p8 = por %p463_p7, %p462_p6 }
  0x2f   :  { %p465_p9 = pnand %p464_p8, %p458_p5 }
  0x31   :  { %468 = shalt.err (!%p465_p9)
}
  0x32   :  { %48 = dma.hbm_to_vmem [thread:$0]  %s598_s3, 1024, %s43_s10, [#allocation6], %s498_s28, %s498_s28, %s499_s29  }
  0x33   :  { %491 = dma.done.wait [#allocation3], 64  }
  0x34   :  { %492 = vsyncadd [#allocation3], 4294967232 }
  0x35   :  { %493 = dma.done.wait [#allocation6], 2048  }
  0x36   :  { %494 = vsyncadd [#allocation6], 4294965248  ;;  %v502_v0 = vmov 0.0   ;;  %vm503_vm0 = vmmov 0   ;;  %v387_v1 = vld [vmem:[#allocation5] sm:$0xff]   ;;  %v388_v2 = vld [vmem:[#allocation5 + $0x8] sm:$0xff]  }
  0x37   :  { %339 = vmatprep.subr.bf16.mxu0 %v502_v0  ;;  %355 = vmatprep.mubr.msk.bf16.mxu0 %vm503_vm0, %v502_v0  ;;  %v389_v3 = vld [vmem:[#allocation5 + $0x10] sm:$0xff]   ;;  %v395_v4 = vld [vmem:[#allocation7] sm:$0xff]   ;;  %v390_v5 = vld [vmem:[#allocation5 + $0x18] sm:$0xff]   ;;  %s504_s7 = smov [#allocation8]  }
  0x38   :  { %359 = vmatprep.subr.bf16.mxu1 %v502_v0  ;;  %375 = vmatprep.mubr.msk.bf16.mxu1 %vm503_vm0, %v502_v0  ;;  %v396_v6 = vld [vmem:[#allocation7 + $0x8] sm:$0xff]   ;;  %v391_v7 = vld [vmem:[#allocation5 + $0x20] sm:$0xff]   ;;  %v397_v8 = vld [vmem:[#allocation7 + $0x10] sm:$0xff]   ;;  %s293_s8 = sshll.u32 %s504_s7, 4  ;;  %s294_s8 = int_to_ptr.vmem [resolvable:$true] %s293_s8 }
  0x39   :  { %340 = vmatpush3.bf16.msra.mxu0 %v387_v1  ;;  %360 = vmatpush3.bf16.msra.mxu1 %v395_v4  ;;  %v392_v9 = vld [vmem:[#allocation5 + $0x28] sm:$0xff]   ;;  %v398_v10 = vld [vmem:[#allocation7 + $0x18] sm:$0xff]   ;;  %v393_v11 = vld [vmem:[#allocation5 + $0x30] sm:$0xff]   ;;  %p474_p11 = scmp.lt.s32.totalorder %s294_s8, %s294_s8 }
  0x3a   :  { %341 = vmatprep.subr.bf16.mxu0 %v502_v0  ;;  %361 = vmatprep.subr.bf16.mxu1 %v502_v0  ;;  %v399_v12 = vld [vmem:[#allocation7 + $0x20] sm:$0xff]   ;;  %v394_v13 = vld [vmem:[#allocation5 + $0x38] sm:$0xff]   ;;  %v400_v14 = vld [vmem:[#allocation7 + $0x28] sm:$0xff]  }
  0x3b   :  { %v61_v15 = vld [vmem:[#allocation2] sm:$0xf]  ;;  %v401_v16 = vld [vmem:[#allocation7 + $0x30] sm:$0xff]  }
  0x3c   :  { %v402_v17 = vld [vmem:[#allocation7 + $0x38] sm:$0xff]  }
  0x3d   :  { %342 = vmatpush3.bf16.msra.mxu0 %v388_v2  ;;  %362 = vmatpush3.bf16.msra.mxu1 %v396_v6  ;;  %v303_v18 = vld [vmem:[%s597_s2] ss:$0 sm:$0xff]  ;;  %s469_s2 = scalar_lea.vmem %s294_s8, 128 }
  0x3e   :  { %343 = vmatprep.subr.bf16.mxu0 %v502_v0  ;;  %363 = vmatprep.subr.bf16.mxu1 %v502_v0  ;;  %v312_v26 = vld [vmem:[%s599_s4] ss:$0 sm:$0xff]  ;;  %p470_p10 = scmp.ne.s32.totalorder %s294_s8, %s469_s2  ;;  %p475_p12 = scmp.lt.s32.totalorder %s469_s2, %s469_s2 }
  0x40   :  { %p476_p13 = por %p475_p12, %p474_p11 }
  0x41   :  { %344 = vmatpush3.bf16.msra.mxu0 %v389_v3  ;;  %364 = vmatpush3.bf16.msra.mxu1 %v397_v8 }
  0x42   :  { %345 = vmatprep.subr.bf16.mxu0 %v502_v0  ;;  %365 = vmatprep.subr.bf16.mxu1 %v502_v0  ;;  %p477_p0 = pnand %p476_p13, %p470_p10 }
  0x45   :  { %346 = vmatpush3.bf16.msra.mxu0 %v390_v5  ;;  %366 = vmatpush3.bf16.msra.mxu1 %v398_v10 }
  0x46   :  { %347 = vmatprep.subr.bf16.mxu0 %v502_v0  ;;  %367 = vmatprep.subr.bf16.mxu1 %v502_v0 }
  0x49   :  { %348 = vmatpush3.bf16.msra.mxu0 %v391_v7  ;;  %368 = vmatpush3.bf16.msra.mxu1 %v399_v12 }
  0x4a   :  { %349 = vmatprep.subr.bf16.mxu0 %v502_v0  ;;  %369 = vmatprep.subr.bf16.mxu1 %v502_v0 }
  0x4d   :  { %350 = vmatpush3.bf16.msra.mxu0 %v392_v9  ;;  %370 = vmatpush3.bf16.msra.mxu1 %v400_v14 }
  0x4e   :  { %351 = vmatprep.subr.bf16.mxu0 %v502_v0  ;;  %371 = vmatprep.subr.bf16.mxu1 %v502_v0 }
  0x51   :  { %352 = vmatpush3.bf16.msra.mxu0 %v393_v11  ;;  %372 = vmatpush3.bf16.msra.mxu1 %v401_v16 }
  0x52   :  { %353 = vmatprep.subr.bf16.mxu0 %v502_v0  ;;  %373 = vmatprep.subr.bf16.mxu1 %v502_v0 }
  0x55   :  { %354 = vmatpush3.bf16.msra.mxu0 %v394_v13  ;;  %374 = vmatpush3.bf16.msra.mxu1 %v402_v17 }
  0x58   :  { %356 = vmatmul.mubr.bf16.vlgmr.msra.gmra.mrb[0].mxu0 %v61_v15 }
 0x12b   :  { %v167_v19 = vpop.f32.mrb[0].mxu0 }
 0x12c   :  { %v168_v20 = vadd.f32 %v303_v18, %v167_v19  ;;  %v357_v21 = vpop.f32.mrb[1].mxu0 }
 0x12d   :  { %v170_v22 = vpop.f32.mrb[2].mxu0 }
 0x12e   :  { %v173_v23 = vmax.f32 %v168_v20, 0.0  ;;  %v358_v24 = vpop.f32.mrb[3].mxu0 }
 0x130   :  { %v174_v25 = vpack.c.bf16 %v173_v23, %v173_v23 }
 0x132   :  { %376 = vmatmul.mubr.bf16.vlgmr.msra.gmra.mrb[0].mxu1 %v174_v25 }
 0x205   :  { %v280_v27 = vpop.f32.mrb[0].mxu1 }
 0x206   :  { %v281_v28 = vadd.f32 %v312_v26, %v280_v27  ;;  %v377_v29 = vpop.f32.mrb[1].mxu1 }
 0x207   :  { %v283_v30 = vpop.f32.mrb[2].mxu1 }
 0x208   :  { %286 = vst [vmem:[#allocation8] sm:$0xff] %v281_v28  ;;  %v378_v31 = vpop.f32.mrb[3].mxu1 }
 0x209   :  { %480 = shalt.err (!%p477_p0)
}
 0x20a   :  { %s481_s4 = scalar_lea.hbm %s600_s5, 128 }
 0x20b   :  { %p482_p1 = scmp.ne.s32.totalorder %s600_s5, %s481_s4  ;;  %p485_p2 = scmp.lt.u32.totalorder %s481_s4, %s600_s5 }
 0x20d   :  { %p487_p3 = pnand %p485_p2, %p482_p1 }
 0x20f   :  { %490 = shalt.err (!%p487_p3)
}
 0x210   :  { %296 = dma.vmem_to_hbm [thread:$0]  %s294_s8, 128, %s600_s5, [#allocation4]  }
 0x211   :  { %495 = dma.done.wait [#allocation4], 128  }
 0x212   :  { %496 = vsyncadd [#allocation4], 4294967168 }
 0x213   :  { %300 = vsyncpa [#allocation3], 1 }
 0x214   :  { %301 = vsyncpa [#allocation6], 1 }
 0x215   :  { %302 = vsyncpa [#allocation4], 1 }

// kernel: tpu_custom_call.1
= control target key start
LH: loop header
LB: loop body
LE: loop exit
PB: predicated region body
PF: predicated region fallthrough
CT: control target
= control target key end

     0   :  { %10 = vsyncpa [#allocation3], 0  ;;  %s595_s0 = inlined_call_operand.hbm [shape: bf16[8,128], index: 0, kind: input, shape index: {}]   ;;  %s596_s1 = inlined_call_operand.hbm [shape: bf16[128,128], index: 1, kind: input, shape index: {}]   ;;  %s597_s2 = inlined_call_operand.vmem [shape: f32[1,128], index: 2, kind: input, shape index: {}]   ;;  %s598_s3 = inlined_call_operand.hbm [shape: bf16[128,128], index: 3, kind: input, shape index: {}]   ;;  %s599_s4 = inlined_call_operand.vmem [shape: f32[1,128], index: 4, kind: input, shape index: {}]   ;;  %s600_s5 = inlined_call_operand.hbm [shape: f32[8,128], index: 5, kind: output, shape index: {}]  }
   0x1   :  { %11 = vsyncpa [#allocation6], 0 }
   0x2   :  { %12 = vsyncpa [#allocation4], 0  ;;  %s497_s18 = smov [#allocation5]   ;;  %s403_s22 = scalar_lea.hbm %s596_s1, 1024 }
   0x3   :  { %s28_s19 = sshll.u32 %s497_s18, 4  ;;  %p404_p0 = scmp.ne.s32.totalorder %s596_s1, %s403_s22  ;;  %s29_s19 = int_to_ptr.vmem [resolvable:$true] %s28_s19 }
   0x4   :  { %p407_p1 = scmp.lt.u32.totalorder %s403_s22, %s596_s1 }
   0x6   :  { %p409_p2 = pnand %p407_p1, %p404_p0 }
   0x8   :  { %412 = shalt.err (!%p409_p2)
}
   0x9   :  { %s413_s27 = scalar_lea.vmem %s29_s19, 1024  ;;  %p418_p4 = scmp.lt.s32.totalorder %s29_s19, %s29_s19 }
   0xa   :  { %p414_p3 = scmp.ne.s32.totalorder %s29_s19, %s413_s27  ;;  %p419_p5 = scmp.lt.s32.totalorder %s413_s27, %s413_s27 }
   0xc   :  { %p420_p6 = por %p419_p5, %p418_p4 }
   0xe   :  { %p421_p7 = pnand %p420_p6, %p414_p3 }
  0x10   :  { %424 = shalt.err (!%p421_p7)
}
  0x11   :  { %s498_s28 = smov 64   ;;  %s499_s29 = smov 4  }
  0x12   :  { %34 = dma.hbm_to_vmem [thread:$0]  %s596_s1, 1024, %s29_s19, [#allocation6], %s498_s28, %s498_s28, %s499_s29  }
  0x13   :  { %s500_s7 = smov [#allocation2]   ;;  %s501_s9 = smov [#allocation7]  }
  0x14   :  { %s19_s8 = sshll.u32 %s500_s7, 4  ;;  %s42_s10 = sshll.u32 %s501_s9, 4  ;;  %s20_s8 = int_to_ptr.vmem [resolvable:$true] %s19_s8  ;;  %s43_s10 = int_to_ptr.vmem [resolvable:$true] %s42_s10 }
  0x15   :  { %s425_s13 = scalar_lea.hbm %s595_s0, 64 }
  0x16   :  { %p426_p8 = scmp.ne.s32.totalorder %s595_s0, %s425_s13  ;;  %p429_p9 = scmp.lt.u32.totalorder %s425_s13, %s595_s0 }
  0x18   :  { %p431_p10 = pnand %p429_p9, %p426_p8 }
  0x1a   :  { %434 = shalt.err (!%p431_p10)
}
  0x1b   :  { %s435_s1 = scalar_lea.vmem %s20_s8, 64  ;;  %p440_p12 = scmp.lt.s32.totalorder %s20_s8, %s20_s8 }
  0x1c   :  { %p436_p11 = scmp.ne.s32.totalorder %s20_s8, %s435_s1  ;;  %p441_p13 = scmp.lt.s32.totalorder %s435_s1, %s435_s1 }
  0x1e   :  { %p442_p0 = por %p441_p13, %p440_p12 }
  0x20   :  { %p443_p1 = pnand %p442_p0, %p436_p11 }
  0x22   :  { %446 = shalt.err (!%p443_p1)
}
  0x23   :  { %22 = dma.hbm_to_vmem [thread:$0]  %s595_s0, 64, %s20_s8, [#allocation3]  }
  0x24   :  { %s447_s22 = scalar_lea.hbm %s598_s3, 1024 }
  0x25   :  { %p448_p2 = scmp.ne.s32.totalorder %s598_s3, %s447_s22  ;;  %p451_p3 = scmp.lt.u32.totalorder %s447_s22, %s598_s3 }
  0x27   :  { %p453_p4 = pnand %p451_p3, %p448_p2 }
  0x29   :  { %456 = shalt.err (!%p453_p4)
}
  0x2a   :  { %s457_s27 = scalar_lea.vmem %s43_s10, 1024  ;;  %p462_p6 = scmp.lt.s32.totalorder %s43_s10, %s43_s10 }
  0x2b   :  { %p458_p5 = scmp.ne.s32.totalorder %s43_s10, %s457_s27  ;;  %p463_p7 = scmp.lt.s32.totalorder %s457_s27, %s457_s27 }
  0x2d   :  { %p464_p8 = por %p463_p7, %p462_p6 }
  0x2f   :  { %p465_p9 = pnand %p464_p8, %p458_p5 }
  0x31   :  { %468 = shalt.err (!%p465_p9)
}
  0x32   :  { %48 = dma.hbm_to_vmem [thread:$0]  %s598_s3, 1024, %s43_s10, [#allocation6], %s498_s28, %s498_s28, %s499_s29  }
  0x33   :  { %491 = dma.done.wait [#allocation3], 64  }
  0x34   :  { %492 = vsyncadd [#allocation3], 4294967232 }
  0x35   :  { %493 = dma.done.wait [#allocation6], 2048  }
  0x36   :  { %494 = vsyncadd [#allocation6], 4294965248  ;;  %v502_v0 = vmov 0.0   ;;  %vm503_vm0 = vmmov 0   ;;  %v387_v1 = vld [vmem:[#allocation5] sm:$0xff]   ;;  %v388_v2 = vld [vmem:[#allocation5 + $0x8] sm:$0xff]  }
  0x37   :  { %339 = vmatprep.subr.bf16.mxu0 %v502_v0  ;;  %355 = vmatprep.mubr.msk.bf16.mxu0 %vm503_vm0, %v502_v0  ;;  %v389_v3 = vld [vmem:[#allocation5 + $0x10] sm:$0xff]   ;;  %v395_v4 = vld [vmem:[#allocation7] sm:$0xff]   ;;  %v390_v5 = vld [vmem:[#allocation5 + $0x18] sm:$0xff]   ;;  %s504_s7 = smov [#allocation8]  }
  0x38   :  { %359 = vmatprep.subr.bf16.mxu1 %v502_v0  ;;  %375 = vmatprep.mubr.msk.bf16.mxu1 %vm503_vm0, %v502_v0  ;;  %v396_v6 = vld [vmem:[#allocation7 + $0x8] sm:$0xff]   ;;  %v391_v7 = vld [vmem:[#allocation5 + $0x20] sm:$0xff]   ;;  %v397_v8 = vld [vmem:[#allocation7 + $0x10] sm:$0xff]   ;;  %s293_s8 = sshll.u32 %s504_s7, 4  ;;  %s294_s8 = int_to_ptr.vmem [resolvable:$true] %s293_s8 }
  0x39   :  { %340 = vmatpush3.bf16.msra.mxu0 %v387_v1  ;;  %360 = vmatpush3.bf16.msra.mxu1 %v395_v4  ;;  %v392_v9 = vld [vmem:[#allocation5 + $0x28] sm:$0xff]   ;;  %v398_v10 = vld [vmem:[#allocation7 + $0x18] sm:$0xff]   ;;  %v393_v11 = vld [vmem:[#allocation5 + $0x30] sm:$0xff]   ;;  %p474_p11 = scmp.lt.s32.totalorder %s294_s8, %s294_s8 }
  0x3a   :  { %341 = vmatprep.subr.bf16.mxu0 %v502_v0  ;;  %361 = vmatprep.subr.bf16.mxu1 %v502_v0  ;;  %v399_v12 = vld [vmem:[#allocation7 + $0x20] sm:$0xff]   ;;  %v394_v13 = vld [vmem:[#allocation5 + $0x38] sm:$0xff]   ;;  %v400_v14 = vld [vmem:[#allocation7 + $0x28] sm:$0xff]  }
  0x3b   :  { %v61_v15 = vld [vmem:[#allocation2] sm:$0xf]  ;;  %v401_v16 = vld [vmem:[#allocation7 + $0x30] sm:$0xff]  }
  0x3c   :  { %v402_v17 = vld [vmem:[#allocation7 + $0x38] sm:$0xff]  }
  0x3d   :  { %342 = vmatpush3.bf16.msra.mxu0 %v388_v2  ;;  %362 = vmatpush3.bf16.msra.mxu1 %v396_v6  ;;  %v303_v18 = vld [vmem:[%s597_s2] ss:$0 sm:$0xff]  ;;  %s469_s2 = scalar_lea.vmem %s294_s8, 128 }
  0x3e   :  { %343 = vmatprep.subr.bf16.mxu0 %v502_v0  ;;  %363 = vmatprep.subr.bf16.mxu1 %v502_v0  ;;  %v312_v26 = vld [vmem:[%s599_s4] ss:$0 sm:$0xff]  ;;  %p470_p10 = scmp.ne.s32.totalorder %s294_s8, %s469_s2  ;;  %p475_p12 = scmp.lt.s32.totalorder %s469_s2, %s469_s2 }
  0x40   :  { %p476_p13 = por %p475_p12, %p474_p11 }
  0x41   :  { %344 = vmatpush3.bf16.msra.mxu0 %v389_v3  ;;  %364 = vmatpush3.bf16.msra.mxu1 %v397_v8 }
  0x42   :  { %345 = vmatprep.subr.bf16.mxu0 %v502_v0  ;;  %365 = vmatprep.subr.bf16.mxu1 %v502_v0  ;;  %p477_p0 = pnand %p476_p13, %p470_p10 }
  0x45   :  { %346 = vmatpush3.bf16.msra.mxu0 %v390_v5  ;;  %366 = vmatpush3.bf16.msra.mxu1 %v398_v10 }
  0x46   :  { %347 = vmatprep.subr.bf16.mxu0 %v502_v0  ;;  %367 = vmatprep.subr.bf16.mxu1 %v502_v0 }
  0x49   :  { %348 = vmatpush3.bf16.msra.mxu0 %v391_v7  ;;  %368 = vmatpush3.bf16.msra.mxu1 %v399_v12 }
  0x4a   :  { %349 = vmatprep.subr.bf16.mxu0 %v502_v0  ;;  %369 = vmatprep.subr.bf16.mxu1 %v502_v0 }
  0x4d   :  { %350 = vmatpush3.bf16.msra.mxu0 %v392_v9  ;;  %370 = vmatpush3.bf16.msra.mxu1 %v400_v14 }
  0x4e   :  { %351 = vmatprep.subr.bf16.mxu0 %v502_v0  ;;  %371 = vmatprep.subr.bf16.mxu1 %v502_v0 }
  0x51   :  { %352 = vmatpush3.bf16.msra.mxu0 %v393_v11  ;;  %372 = vmatpush3.bf16.msra.mxu1 %v401_v16 }
  0x52   :  { %353 = vmatprep.subr.bf16.mxu0 %v502_v0  ;;  %373 = vmatprep.subr.bf16.mxu1 %v502_v0 }
  0x55   :  { %354 = vmatpush3.bf16.msra.mxu0 %v394_v13  ;;  %374 = vmatpush3.bf16.msra.mxu1 %v402_v17 }
  0x58   :  { %356 = vmatmul.mubr.bf16.vlgmr.msra.gmra.mrb[0].mxu0 %v61_v15 }
 0x12b   :  { %v167_v19 = vpop.f32.mrb[0].mxu0 }
 0x12c   :  { %v168_v20 = vadd.f32 %v303_v18, %v167_v19  ;;  %v357_v21 = vpop.f32.mrb[1].mxu0 }
 0x12d   :  { %v170_v22 = vpop.f32.mrb[2].mxu0 }
 0x12e   :  { %v173_v23 = vmax.f32 %v168_v20, 0.0  ;;  %v358_v24 = vpop.f32.mrb[3].mxu0 }
 0x130   :  { %v174_v25 = vpack.c.bf16 %v173_v23, %v173_v23 }
 0x132   :  { %376 = vmatmul.mubr.bf16.vlgmr.msra.gmra.mrb[0].mxu1 %v174_v25 }
 0x205   :  { %v280_v27 = vpop.f32.mrb[0].mxu1 }
 0x206   :  { %v281_v28 = vadd.f32 %v312_v26, %v280_v27  ;;  %v377_v29 = vpop.f32.mrb[1].mxu1 }
 0x207   :  { %v283_v30 = vpop.f32.mrb[2].mxu1 }
 0x208   :  { %286 = vst [vmem:[#allocation8] sm:$0xff] %v281_v28  ;;  %v378_v31 = vpop.f32.mrb[3].mxu1 }
 0x209   :  { %480 = shalt.err (!%p477_p0)
}
 0x20a   :  { %s481_s4 = scalar_lea.hbm %s600_s5, 128 }
 0x20b   :  { %p482_p1 = scmp.ne.s32.totalorder %s600_s5, %s481_s4  ;;  %p485_p2 = scmp.lt.u32.totalorder %s481_s4, %s600_s5 }
 0x20d   :  { %p487_p3 = pnand %p485_p2, %p482_p1 }
 0x20f   :  { %490 = shalt.err (!%p487_p3)
}
 0x210   :  { %296 = dma.vmem_to_hbm [thread:$0]  %s294_s8, 128, %s600_s5, [#allocation4]  }
 0x211   :  { %495 = dma.done.wait [#allocation4], 128  }
 0x212   :  { %496 = vsyncadd [#allocation4], 4294967168 }
 0x213   :  { %300 = vsyncpa [#allocation3], 1 }
 0x214   :  { %301 = vsyncpa [#allocation6], 1 }
 0x215   :  { %302 = vsyncpa [#allocation4], 1 }

</bundles_post_ra>
